<compile_context>
chip_gen: v7x
topology: tpu7x:2x2x1
jax: 0.10.0
libtpu: 0.0.40
codegen_flags: <defaults>
</compile_context>

<pallas_src>
import functools

import jax
import jax.numpy as jnp
from jax.experimental import pallas as pl
from jax.experimental.pallas import tpu as pltpu

_LANE = 128
_NEG_BIG = -1e30  # plain Python float; baked into the padded linear bias lanes


# ----------------------------- Pallas kernel --------------------------------

def _fused_edgenet_kernel(a_ref, b0_ref, wmid_ref, bmid_ref, w2_ref, b2_ref,
                          wl_ref, bl_ref, o_ref, *, num_mid_layers):
    """Whole EdgeNet forward on one VMEM-resident graph.

    a_ref   : (Np, Np) bf16  normalized adjacency (padded)
    b0_ref  : (1, H)   f32   conv0 bias
    wmid_ref: (H, H)   bf16  conv1 weight (shared mid layers)
    bmid_ref: (1, H)   f32   conv1 bias
    w2_ref  : (H, H)   bf16  conv2 weight
    b2_ref  : (1, H)   f32   conv2 bias
    wl_ref  : (H, Cp)  bf16  linear weight, class dim padded to 128 (pad cols 0)
    bl_ref  : (1, Cp)  f32   linear bias, padded lanes = -1e30
    o_ref   : (Np, Cp) f32   log_softmax output
    """
    a = a_ref[...]  # (Np, Np) bf16 — used for the row-sum and any mid-layer agg

    # --- conv0 with zero input: every row equals relu(conv0_b).
    h_row = jnp.maximum(b0_ref[...], 0.0)  # (1, H) f32

    # --- rank-1 shortcut for the first aggregation after the broadcast state:
    #     A @ (broadcast(h_row) @ W) == rowsum(A)[:, None] * (h_row @ W)
    rowsum = jnp.sum(a.astype(jnp.float32), axis=1, keepdims=True)  # (Np, 1)

    if num_mid_layers == 0:
        first_w_ref, first_b_ref = w2_ref, b2_ref   # conv2 is the first agg
    else:
        first_w_ref, first_b_ref = wmid_ref, bmid_ref  # first mid layer is

    xw_row = jnp.dot(h_row.astype(jnp.bfloat16), first_w_ref[...],
                     preferred_element_type=jnp.float32)          # (1, H)
    h = jnp.maximum(rowsum * xw_row + first_b_ref[...], 0.0)      # (Np, H) f32

    # --- remaining layers need full dense aggregation (rows now differ).
    if num_mid_layers > 0:
        wmid = wmid_ref[...]   # hoisted out of the unrolled loop
        bmid = bmid_ref[...]
        for _ in range(num_mid_layers - 1):
            xw = jnp.dot(h.astype(jnp.bfloat16), wmid,
                         preferred_element_type=jnp.float32)
            agg = jnp.dot(a, xw.astype(jnp.bfloat16),
                          preferred_element_type=jnp.float32)
            h = jnp.maximum(agg + bmid, 0.0)
        # conv2
        xw = jnp.dot(h.astype(jnp.bfloat16), w2_ref[...],
                     preferred_element_type=jnp.float32)
        agg = jnp.dot(a, xw.astype(jnp.bfloat16),
                      preferred_element_type=jnp.float32)
        h = jnp.maximum(agg + b2_ref[...], 0.0)

    # --- linear + log_softmax. Padded class lanes are already -1e30 via the
    #     bias (and zero weight columns), so no in-kernel mask is needed.
    z = jnp.dot(h.astype(jnp.bfloat16), wl_ref[...],
                preferred_element_type=jnp.float32) + bl_ref[...]
    m = jnp.max(z, axis=1, keepdims=True)
    s = z - m
    lse = jnp.log(jnp.sum(jnp.exp(s), axis=1, keepdims=True))
    o_ref[...] = s - lse


def _vmem_spec():
    return pl.BlockSpec(memory_space=pltpu.MemorySpace.VMEM)


# ------------------------------ JAX glue -------------------------------------

def build_gcn_adjacency(edge_index, edge_weight, num_nodes):
    """Dense PyG-GCNConv-normalized adjacency with self-loops (fill value 1.0)."""
    src = edge_index[0]
    dst = edge_index[1]
    loop = jnp.arange(num_nodes, dtype=src.dtype)
    src = jnp.concatenate([src, loop])
    dst = jnp.concatenate([dst, loop])
    w = jnp.concatenate(
        [edge_weight.astype(jnp.float32), jnp.ones((num_nodes,), jnp.float32)]
    )
    deg = jnp.zeros((num_nodes,), jnp.float32).at[dst].add(w)
    dinv = jnp.where(deg > 0, 1.0 / jnp.sqrt(deg), 0.0)
    norm = dinv[src] * w * dinv[dst]
    a_hat = jnp.zeros((num_nodes, num_nodes), jnp.float32).at[dst, src].add(norm)
    return a_hat


def init_params(key, num_feature, num_class, hidden):
    """Raw, PyTorch-convention parameters (nn.Linear weight is (C, H))."""
    ks = jax.random.split(key, 8)
    return {
        # conv0_w kept for parameter fidelity; provably unused (x is zeroed).
        "conv0_w": jax.random.normal(ks[0], (num_feature, hidden), jnp.float32) * 0.1,
        "conv0_b": jax.random.normal(ks[1], (hidden,), jnp.float32) * 0.1,
        "conv1_w": jax.random.normal(ks[2], (hidden, hidden), jnp.float32) * 0.1,
        "conv1_b": jax.random.normal(ks[3], (hidden,), jnp.float32) * 0.1,
        "conv2_w": jax.random.normal(ks[4], (hidden, hidden), jnp.float32) * 0.1,
        "conv2_b": jax.random.normal(ks[5], (hidden,), jnp.float32) * 0.1,
        "lin_w": jax.random.normal(ks[6], (num_class, hidden), jnp.float32),
        "lin_b": jax.random.normal(ks[7], (num_class,), jnp.float32),
    }


def prepare_kernel_params(params):
    """One-time host-side prep: transpose/pad/cast so the per-call forward does
    no constant work (padded class lanes carry -1e30 bias / zero weights)."""
    hidden = params["conv0_b"].shape[0]
    num_class = params["lin_b"].shape[0]
    pad_c = ((num_class + _LANE - 1) // _LANE) * _LANE

    wl = jnp.zeros((hidden, pad_c), jnp.float32)
    wl = wl.at[:, :num_class].set(params["lin_w"].T)          # nn.Linear is (C,H)
    bl = jnp.full((1, pad_c), _NEG_BIG, jnp.float32)
    bl = bl.at[:, :num_class].set(params["lin_b"])

    return {
        "conv0_b": params["conv0_b"].reshape(1, -1).astype(jnp.float32),
        "conv1_w": params["conv1_w"].astype(jnp.bfloat16),
        "conv1_b": params["conv1_b"].reshape(1, -1).astype(jnp.float32),
        "conv2_w": params["conv2_w"].astype(jnp.bfloat16),
        "conv2_b": params["conv2_b"].reshape(1, -1).astype(jnp.float32),
        "lin_w_pad": wl.astype(jnp.bfloat16),
        "lin_b_pad": bl,
    }


def edgenet_forward(kparams, x, edge_index, edge_attr, *, num_layers=2,
                    num_class=None):
    edge_weight = edge_attr[:, 0]                # data.edge_attr.squeeze(1)
    n = x.shape[0]
    hidden = kparams["conv0_b"].shape[1]
    pad_c = kparams["lin_b_pad"].shape[1]
    if num_class is None:
        num_class = pad_c

    # Dense normalized adjacency, padded to lane-dense N and cast to bf16.
    n_pad = ((n + _LANE - 1) // _LANE) * _LANE
    a_hat = build_gcn_adjacency(edge_index, edge_weight, n)
    if n_pad != n:
        a_hat = jnp.pad(a_hat, ((0, n_pad - n), (0, n_pad - n)))
    a_hat = a_hat.astype(jnp.bfloat16)

    num_mid_layers = max(num_layers - 2, 0)
    kernel = functools.partial(_fused_edgenet_kernel,
                               num_mid_layers=num_mid_layers)

    # VMEM budget: A (bf16) dominates; add output, a few H-sized temps, weights.
    est_bytes = (2 * n_pad * n_pad
                 + 4 * n_pad * pad_c
                 + 6 * 4 * n_pad * hidden
                 + 2 * hidden * (2 * hidden + pad_c)
                 + 4 * (3 * hidden + pad_c))
    vmem_limit = int(min(120 * 2**20, max(32 * 2**20, 2 * est_bytes)))

    out_padded = pl.pallas_call(
        kernel,
        out_shape=jax.ShapeDtypeStruct((n_pad, pad_c), jnp.float32),
        in_specs=[_vmem_spec() for _ in range(8)],
        out_specs=_vmem_spec(),
        compiler_params=pltpu.CompilerParams(vmem_limit_bytes=vmem_limit),
    )(
        a_hat,
        kparams["conv0_b"],
        kparams["conv1_w"],
        kparams["conv1_b"],
        kparams["conv2_w"],
        kparams["conv2_b"],
        kparams["lin_w_pad"],
        kparams["lin_b_pad"],
    )
    return out_padded[:n, :num_class]


# -------------------------------- main ---------------------------------------

if __name__ == "__main__":
    key = jax.random.PRNGKey(0)
    k_param, k_x, k_src, k_dst, k_w = jax.random.split(key, 5)

    N = 64            # nodes
    NUM_FEATURE = 16
    HIDDEN = 32
    NUM_CLASS = 8
    E = 128           # edges

    raw_params = init_params(k_param, NUM_FEATURE, NUM_CLASS, HIDDEN)
    kparams = prepare_kernel_params(raw_params)       # one-time pad/cast/transpose

    x = jax.random.normal(k_x, (N, NUM_FEATURE), jnp.float32)
    src = jax.random.randint(k_src, (E,), 0, N, jnp.int32)
    dst = jax.random.randint(k_dst, (E,), 0, N, jnp.int32)
    edge_index = jnp.stack([src, dst], axis=0)                          # (2, E)
    edge_attr = jax.random.uniform(k_w, (E, 1), jnp.float32, 0.1, 1.0)  # (E, 1)

    fwd = jax.jit(functools.partial(edgenet_forward,
                                    num_layers=2, num_class=NUM_CLASS))
    out = fwd(kparams, x, edge_index, edge_attr)
    out = jax.block_until_ready(out)

    assert out.shape == (N, NUM_CLASS)
    # log_softmax rows should sum to 1 in prob space
    assert jnp.allclose(jnp.sum(jnp.exp(out), axis=1), 1.0, atol=1e-3)
    print("KERNEL_OK")
</pallas_src>

<mosaic_0001>
module attributes {stable_mosaic.version = 11 : i64} {
  func.func private @main(%arg0: i32) attributes {dimension_semantics = [#tpu.dimension_semantics<core_parallel>], iteration_bounds = array<i64: 2>, tpu.core_type = #tpu.core_type<sc_scalar_subcore>, window_params = []} {
    return
  }
}

module attributes {stable_mosaic.version = 11 : i64} {
  func.func private @main(%arg0: i32) attributes {dimension_semantics = [#tpu.dimension_semantics<core_parallel>], iteration_bounds = array<i64: 2>, tpu.core_type = #tpu.core_type<sc_scalar_subcore>, window_params = []} {
    return
  }
}

module attributes {stable_mosaic.version = 11 : i64} {
  func.func @_fused_edgenet_kernel(%arg0: memref<128x128xbf16, #tpu.memory_space<vmem>>, %arg1: memref<1x32xf32, #tpu.memory_space<vmem>>, %arg2: memref<32x32xbf16, #tpu.memory_space<vmem>>, %arg3: memref<1x32xf32, #tpu.memory_space<vmem>>, %arg4: memref<32x32xbf16, #tpu.memory_space<vmem>>, %arg5: memref<1x32xf32, #tpu.memory_space<vmem>>, %arg6: memref<32x128xbf16, #tpu.memory_space<vmem>>, %arg7: memref<1x128xf32, #tpu.memory_space<vmem>>, %arg8: memref<128x128xf32, #tpu.memory_space<vmem>>) attributes {dimension_semantics = [], scalar_prefetch = 0 : i64, scratch_operands = 0 : i64, tpu.core_type = #tpu.core_type<tc>} {
    %c0 = arith.constant 0 : index
    %c0_0 = arith.constant 0 : index
    %0 = vector.load %arg0[%c0, %c0_0] : memref<128x128xbf16, #tpu.memory_space<vmem>>, vector<128x128xbf16>
    %c0_1 = arith.constant 0 : index
    %c0_2 = arith.constant 0 : index
    %1 = vector.load %arg1[%c0_1, %c0_2] : memref<1x32xf32, #tpu.memory_space<vmem>>, vector<1x32xf32>
    %cst = arith.constant 0.000000e+00 : f32
    %2 = vector.broadcast %cst : f32 to vector<1x32xf32>
    %3 = arith.maximumf %1, %2 : vector<1x32xf32>
    %4 = arith.extf %0 : vector<128x128xbf16> to vector<128x128xf32>
    %cst_3 = arith.constant dense<0.000000e+00> : vector<128xf32>
    %5 = vector.multi_reduction <add>, %4, %cst_3 [1] : vector<128x128xf32> to vector<128xf32>
    %6 = vector.shape_cast %5 : vector<128xf32> to vector<128x1xf32>
    %7 = arith.truncf %3 : vector<1x32xf32> to vector<1x32xbf16>
    %c0_4 = arith.constant 0 : index
    %c0_5 = arith.constant 0 : index
    %8 = vector.load %arg4[%c0_4, %c0_5] : memref<32x32xbf16, #tpu.memory_space<vmem>>, vector<32x32xbf16>
    %cst_6 = arith.constant dense<0.000000e+00> : vector<1x32xf32>
    %9 = tpu.matmul %7, %8, %cst_6 {dimension_numbers = #tpu.dot_dimension_numbers<[1], [0], [0], [1], [0, 0, 1, 1], [], []>} : vector<1x32xbf16>, vector<32x32xbf16>, vector<1x32xf32> -> vector<1x32xf32>
    %10 = vector.broadcast %6 : vector<128x1xf32> to vector<128x32xf32>
    %11 = vector.broadcast %9 : vector<1x32xf32> to vector<128x32xf32>
    %12 = arith.mulf %10, %11 : vector<128x32xf32>
    %c0_7 = arith.constant 0 : index
    %c0_8 = arith.constant 0 : index
    %13 = vector.load %arg5[%c0_7, %c0_8] : memref<1x32xf32, #tpu.memory_space<vmem>>, vector<1x32xf32>
    %14 = vector.broadcast %13 : vector<1x32xf32> to vector<128x32xf32>
    %15 = arith.addf %12, %14 : vector<128x32xf32>
    %cst_9 = arith.constant 0.000000e+00 : f32
    %16 = vector.broadcast %cst_9 : f32 to vector<128x32xf32>
    %17 = arith.maximumf %15, %16 : vector<128x32xf32>
    %18 = arith.truncf %17 : vector<128x32xf32> to vector<128x32xbf16>
    %c0_10 = arith.constant 0 : index
    %c0_11 = arith.constant 0 : index
    %19 = vector.load %arg6[%c0_10, %c0_11] : memref<32x128xbf16, #tpu.memory_space<vmem>>, vector<32x128xbf16>
    %cst_12 = arith.constant dense<0.000000e+00> : vector<128x128xf32>
    %20 = tpu.matmul %18, %19, %cst_12 {dimension_numbers = #tpu.dot_dimension_numbers<[1], [0], [0], [1], [0, 0, 1, 1], [], []>} : vector<128x32xbf16>, vector<32x128xbf16>, vector<128x128xf32> -> vector<128x128xf32>
    %c0_13 = arith.constant 0 : index
    %c0_14 = arith.constant 0 : index
    %21 = vector.load %arg7[%c0_13, %c0_14] : memref<1x128xf32, #tpu.memory_space<vmem>>, vector<1x128xf32>
    %22 = vector.broadcast %21 : vector<1x128xf32> to vector<128x128xf32>
    %23 = arith.addf %20, %22 : vector<128x128xf32>
    %cst_15 = arith.constant dense<0xFF800000> : vector<128xf32>
    %24 = vector.multi_reduction <maximumf>, %23, %cst_15 [1] : vector<128x128xf32> to vector<128xf32>
    %25 = vector.shape_cast %24 : vector<128xf32> to vector<128x1xf32>
    %26 = vector.broadcast %25 : vector<128x1xf32> to vector<128x128xf32>
    %27 = arith.subf %23, %26 : vector<128x128xf32>
    %28 = math.exp %27 : vector<128x128xf32>
    %cst_16 = arith.constant dense<0.000000e+00> : vector<128xf32>
    %29 = vector.multi_reduction <add>, %28, %cst_16 [1] : vector<128x128xf32> to vector<128xf32>
    %30 = vector.shape_cast %29 : vector<128xf32> to vector<128x1xf32>
    %31 = math.log %30 : vector<128x1xf32>
    %32 = vector.broadcast %31 : vector<128x1xf32> to vector<128x128xf32>
    %33 = arith.subf %27, %32 : vector<128x128xf32>
    %c0_17 = arith.constant 0 : index
    %c0_18 = arith.constant 0 : index
    %34 = vector.load %arg8[%c0_17, %c0_18] : memref<128x128xf32, #tpu.memory_space<vmem>>, vector<128x128xf32>
    tpu.vector_store %arg8[%c0_17, %c0_18], %33 {strides = array<i32>} : memref<128x128xf32, #tpu.memory_space<vmem>>, vector<128x128xf32>,
    return
  }
}

</mosaic_0001>

<bundles_post_ra>
// kernel: edgenet_forward.1
= control target key start
LH: loop header
LB: loop body
LE: loop exit
PB: predicated region body
PF: predicated region fallthrough
CT: control target
= control target key end

     0   :  { %v717_v0 = vmov 0.0   ;;  %vm718_vm0 = vmmov 0   ;;  %vm113_vm1 = vcmask 261120   ;;  %v157_v40 = vlaneseq  ;;  %s954_s2 = inlined_call_operand.vmem [shape: bf16[32,32], index: 2, kind: input, shape index: {}]   ;;  %s955_s3 = inlined_call_operand.vmem [shape: f32[1,32], index: 3, kind: input, shape index: {}]   ;;  %s956_s4 = inlined_call_operand.vmem [shape: bf16[32,32], index: 4, kind: input, shape index: {}]   ;;  %s957_s1 = inlined_call_operand.vmem [shape: f32[1,32], index: 1, kind: input, shape index: {}]   ;;  %s958_s0 = inlined_call_operand.vmem [shape: bf16[128,128], index: 0, kind: input, shape index: {}]   ;;  %s959_s6 = inlined_call_operand.vmem [shape: bf16[32,128], index: 6, kind: input, shape index: {}]   ;;  %s960_s5 = inlined_call_operand.vmem [shape: f32[1,32], index: 5, kind: input, shape index: {}]   ;;  %s961_s7 = inlined_call_operand.vmem [shape: f32[1,128], index: 7, kind: input, shape index: {}]   ;;  %s962_s8 = inlined_call_operand.vmem [shape: f32[128,128], index: 8, kind: output, shape index: {}]  }
   0x1   :  { %615 = vmatprep.subr.bf16.mxu0 %v717_v0  ;;  %v649_v1 = vld [vmem:[%s956_s4] sm:$0xff]   ;;  %619 = vmatprep.mubr.msk.bf16.mxu0 %vm718_vm0, %v717_v0  ;;  %v650_v2 = vld [vmem:[%s956_s4 + $0x8] sm:$0xff]   ;;  %v597_v4 = vld [vmem:[%s958_s0 + $0x18] sm:$0xff]  }
   0x2   :  { %616 = vmatpush3.bf16.msra.mxu0 %v649_v1  ;;  %v46_v3 = vld [vmem:[%s957_s1] sm:$0x1]  ;;  %v596_v5 = vld [vmem:[%s958_s0 + $0x10] sm:$0xff]   ;;  %v577_v7 = vunpack.c.l.bf16 %v597_v4  ;;  %v578_v10 = vunpack.c.h.bf16 %v597_v4  ;;  %v599_v15 = vld [vmem:[%s958_s0 + $0x28] sm:$0xff]   ;;  %v158_v43 = vshrl.u32 %v157_v40, 7 }
   0x3   :  { %617 = vmatprep.subr.bf16.mxu0 %v717_v0  ;;  %v47_v6 = vmax.f32 %v46_v3, 0.0  ;;  %v573_v8 = vunpack.c.l.bf16 %v596_v5  ;;  %v574_v11 = vunpack.c.h.bf16 %v596_v5  ;;  %v598_v12 = vld [vmem:[%s958_s0 + $0x20] sm:$0xff]   ;;  %v586_v16 = vunpack.c.h.bf16 %v599_v15  ;;  %v600_v21 = vld [vmem:[%s958_s0 + $0x30] sm:$0xff]   ;;  %v595_v24 = vld [vmem:[%s958_s0 + $0x8] sm:$0xff]  }
   0x4   :  { %76 = vadd.xlane.f32.xlu1 %v577_v7  ;;  %v582_v13 = vunpack.c.h.bf16 %v598_v12  ;;  %v581_v14 = vunpack.c.l.bf16 %v598_v12  ;;  %v585_v17 = vunpack.c.l.bf16 %v599_v15  ;;  %v564_v18 = vld [vmem:[%s958_s0] sm:$0xff]   ;;  %v590_v22 = vunpack.c.h.bf16 %v600_v21  ;;  %v601_v27 = vld [vmem:[%s958_s0 + $0x38] sm:$0xff]   ;;  %v652_v31 = vld [vmem:[%s959_s6 + $0x8] sm:$0xff]  }
   0x5   :  { %v96_v9 = vpack.c.bf16 %v47_v6, %v47_v6  ;;  %72 = vadd.xlane.f32.xlu0 %v573_v8  ;;  %v566_v19 = vunpack.c.h.bf16 %v564_v18  ;;  %v565_v20 = vunpack.c.l.bf16 %v564_v18  ;;  %v589_v23 = vunpack.c.l.bf16 %v600_v21  ;;  %v651_v30 = vld [vmem:[%s959_s6] sm:$0xff]  }
   0x6   :  { %618 = vmatpush3.bf16.msra.mxu0 %v650_v2  ;;  %v570_v25 = vunpack.c.h.bf16 %v595_v24  ;;  %v569_v26 = vunpack.c.l.bf16 %v595_v24  ;;  %v594_v28 = vunpack.c.h.bf16 %v601_v27  ;;  %v593_v29 = vunpack.c.l.bf16 %v601_v27  ;;  %643 = vmatprep.subr.bf16.mxu1 %v651_v30  ;;  %v551_v52 = vld [vmem:[%s960_s5] ss:$0 sm:$0xff] }
   0x7   :  { %623 = vmatprep.subr.bf16.mxu0 %v651_v30  ;;  %645 = vmatpush3.bf16.msra.mxu1 %v651_v30  ;;  %v159_v46 = vsub.s32 0, %v158_v43 }
   0x8   :  { %78 = vadd.xlane.f32.xlu1 %v578_v10  ;;  %644 = vmatprep.subr.bf16.mxu1 %v652_v31 }
   0x9   :  { %620 = vmatmul.mubr.msk.bf16.vlgmr.msra.gmra.mrb[0].mxu0 %vm113_vm1, %v96_v9  ;;  %74 = vadd.xlane.f32.xlu0 %v574_v11 }
   0xa   :  { %624 = vmatpush3.bf16.msra.mxu0 %v651_v30 }
   0xb   :  { %625 = vmatprep.subr.bf16.mxu0 %v652_v31  ;;  %646 = vmatpush3.bf16.msra.mxu1 %v652_v31 }
   0xc   :  { %82 = vadd.xlane.f32.xlu1 %v582_v13 }
   0xd   :  { %80 = vadd.xlane.f32.xlu0 %v581_v14 }
   0xe   :  { %626 = vmatpush3.bf16.msra.mxu0 %v652_v31 }
  0x10   :  { %86 = vadd.xlane.f32.xlu1 %v586_v16 }
  0x11   :  { %84 = vadd.xlane.f32.xlu0 %v585_v17 }
  0x14   :  { %66 = vadd.xlane.f32.xlu1 %v566_v19 }
  0x15   :  { %64 = vadd.xlane.f32.xlu0 %v565_v20 }
  0x18   :  { %90 = vadd.xlane.f32.xlu1 %v590_v22 }
  0x19   :  { %88 = vadd.xlane.f32.xlu0 %v589_v23 }
  0x1c   :  { %70 = vadd.xlane.f32.xlu1 %v570_v25 }
  0x1d   :  { %68 = vadd.xlane.f32.xlu0 %v569_v26 }
  0x20   :  { %94 = vadd.xlane.f32.xlu1 %v594_v28 }
  0x21   :  { %92 = vadd.xlane.f32.xlu0 %v593_v29 }
  0x91   :  { %v77_v32 = vpop.xlane.xlu1 %76 }
  0x92   :  { %v73_v33 = vpop.xlane.xlu0 %72 }
  0x95   :  { %v79_v34 = vpop.xlane.xlu1 %78 }
  0x96   :  { %v75_v35 = vpop.xlane.xlu0 %74 }
  0x99   :  { %v83_v36 = vpop.xlane.xlu1 %82 }
  0x9a   :  { %v81_v37 = vpop.xlane.xlu0 %80 }
  0x9d   :  { %v87_v38 = vpop.xlane.xlu1 %86 }
  0x9e   :  { %v85_v39 = vpop.xlane.xlu0 %84 }
  0xa1   :  { %v67_v41 = vpop.xlane.xlu1 %66 }
  0xa2   :  { %v65_v42 = vpop.xlane.xlu0 %64 }
  0xa5   :  { %v91_v44 = vpop.xlane.xlu1 %90 }
  0xa6   :  { %v89_v45 = vpop.xlane.xlu0 %88 }
  0xa9   :  { %v71_v50 = vpop.xlane.xlu1 %70 }
  0xaa   :  { %v69_v53 = vpop.xlane.xlu0 %68 }
  0xad   :  { %v95_v31 = vpop.xlane.xlu1 %94 }
  0xdc   :  { %v151_v47 = vpop.f32.mrb[0].mxu0 }
  0xdd   :  { %v160_v48 = vrot.slane %v151_v47, %v159_v46  ;;  %v621_v49 = vpop.f32.mrb[1].mxu0 }
  0xde   :  { %v154_v51 = vpop.f32.mrb[2].mxu0 }
  0xdf   :  { %v622_v54 = vpop.f32.mrb[3].mxu0  ;;  %v161_v55 = vmul.f32 %v160_v48, %v65_v42  ;;  %v162_v56 = vmul.f32 %v160_v48, %v67_v41  ;;  %v165_v57 = vmul.f32 %v160_v48, %v73_v33  ;;  %v166_v58 = vmul.f32 %v160_v48, %v75_v35 }
  0xe0   :  { %v163_v59 = vmul.f32 %v160_v48, %v69_v53  ;;  %v164_v60 = vmul.f32 %v160_v48, %v71_v50  ;;  %v167_v10 = vmul.f32 %v160_v48, %v77_v32  ;;  %v168_v11 = vmul.f32 %v160_v48, %v79_v34  ;;  %v93_v32 = vpop.xlane.xlu0 %92 }
  0xe1   :  { %v184_v61 = vadd.f32 %v551_v52, %v161_v55  ;;  %v185_v62 = vadd.f32 %v551_v52, %v162_v56  ;;  %v188_v63 = vadd.f32 %v551_v52, %v165_v57  ;;  %v189_v0 = vadd.f32 %v551_v52, %v166_v58 }
  0xe2   :  { %v186_v1 = vadd.f32 %v551_v52, %v163_v59  ;;  %v187_v2 = vadd.f32 %v551_v52, %v164_v60  ;;  %v169_v14 = vmul.f32 %v160_v48, %v81_v37  ;;  %v170_v15 = vmul.f32 %v160_v48, %v83_v36 }
  0xe3   :  { %v200_v3 = vmax.f32 %v184_v61, 0.0  ;;  %v201_v4 = vmax.f32 %v185_v62, 0.0  ;;  %v204_v5 = vmax.f32 %v188_v63, 0.0  ;;  %v205_v6 = vmax.f32 %v189_v0, 0.0 }
  0xe4   :  { %v202_v7 = vmax.f32 %v186_v1, 0.0  ;;  %v203_v8 = vmax.f32 %v187_v2, 0.0  ;;  %v190_v16 = vadd.f32 %v551_v52, %v167_v10  ;;  %v191_v17 = vadd.f32 %v551_v52, %v168_v11 }
  0xe5   :  { %v216_v9 = vpack.c.bf16 %v201_v4, %v200_v3  ;;  %v218_v12 = vpack.c.bf16 %v205_v6, %v204_v5  ;;  %v171_v18 = vmul.f32 %v160_v48, %v85_v39  ;;  %v172_v19 = vmul.f32 %v160_v48, %v87_v38 }
  0xe6   :  { %v217_v13 = vpack.c.bf16 %v203_v8, %v202_v7  ;;  %v192_v20 = vadd.f32 %v551_v52, %v169_v14  ;;  %v193_v21 = vadd.f32 %v551_v52, %v170_v15  ;;  %v173_v22 = vmul.f32 %v160_v48, %v89_v45 }
  0xe7   :  { %627 = vmatprep.mubr.msk.bf16.mxu0 %vm113_vm1, %v216_v9  ;;  %631 = vmatprep.mubr.msk.bf16.mxu1 %vm113_vm1, %v218_v12  ;;  %v206_v23 = vmax.f32 %v190_v16, 0.0  ;;  %v207_v24 = vmax.f32 %v191_v17, 0.0  ;;  %v174_v27 = vmul.f32 %v160_v48, %v91_v44  ;;  %v194_v29 = vadd.f32 %v551_v52, %v171_v18 }
  0xe8   :  { %628 = vmatmul.mubr.msk.bf16.vlgmr.msra.gmra.mrb[4].mxu0 %vm113_vm1, %v217_v13  ;;  %v208_v25 = vmax.f32 %v192_v20, 0.0  ;;  %v209_v26 = vmax.f32 %v193_v21, 0.0  ;;  %v195_v30 = vadd.f32 %v551_v52, %v172_v19  ;;  %v196_v34 = vadd.f32 %v551_v52, %v173_v22 }
  0xe9   :  { %v219_v28 = vpack.c.bf16 %v207_v24, %v206_v23  ;;  %v197_v35 = vadd.f32 %v551_v52, %v174_v27  ;;  %v176_v36 = vmul.f32 %v160_v48, %v95_v31  ;;  %v175_v37 = vmul.f32 %v160_v48, %v93_v32  ;;  %v552_v48 = vld [vmem:[%s961_s7] ss:$0 sm:$0xff] }
  0xea   :  { %v220_v33 = vpack.c.bf16 %v209_v26, %v208_v25  ;;  %v210_v38 = vmax.f32 %v194_v29, 0.0  ;;  %v211_v39 = vmax.f32 %v195_v30, 0.0  ;;  %v212_v40 = vmax.f32 %v196_v34, 0.0 }
  0xeb   :  { %632 = vmatmul.mubr.msk.bf16.vlgmr.msra.gmra.mrb[0].mxu1 %vm113_vm1, %v219_v28  ;;  %v213_v41 = vmax.f32 %v197_v35, 0.0  ;;  %v199_v42 = vadd.f32 %v551_v52, %v176_v36  ;;  %v198_v43 = vadd.f32 %v551_v52, %v175_v37 }
  0xec   :  { %635 = vmatprep.mubr.msk.bf16.mxu1 %vm113_vm1, %v220_v33  ;;  %v221_v44 = vpack.c.bf16 %v211_v39, %v210_v38 }
  0xed   :  { %v222_v45 = vpack.c.bf16 %v213_v41, %v212_v40  ;;  %v215_v46 = vmax.f32 %v199_v42, 0.0  ;;  %v214_v47 = vmax.f32 %v198_v43, 0.0 }
  0xef   :  { %v223_v49 = vpack.c.bf16 %v215_v46, %v214_v47 }
  0xf3   :  { %636 = vmatmul.mubr.msk.bf16.gmra.mrb[4].mxu1 %vm113_vm1, %v221_v44 }
  0xf4   :  { %639 = vmatprep.mubr.msk.bf16.mxu1 %vm113_vm1, %v222_v45 }
  0xfb   :  { %640 = vmatmul.mubr.msk.bf16.gmra.mrb[8].mxu1 %vm113_vm1, %v223_v49 }
 0x1bb   :  { %v629_v50 = vpop.f32.mrb[4].mxu0 }
 0x1bc   :  { %v314_v51 = vadd.f32 %v629_v50, %v552_v48  ;;  %v305_v53 = vpop.f32.mrb[5].mxu0 }
 0x1bd   :  { %v630_v54 = vpop.f32.mrb[6].mxu0  ;;  %v306_v62 = vadd.f32 %v552_v48, %v305_v53 }
 0x1be   :  { %v317_v52 = vadd.f32 %v630_v54, %v552_v48  ;;  %372 = vmax.xlane.f32.xlu0 %v314_v51  ;;  %v308_v55 = vpop.f32.mrb[7].mxu0  ;;  %v633_v56 = vpop.f32.mrb[0].mxu1 }
 0x1bf   :  { %v330_v57 = vadd.f32 %v633_v56, %v552_v48  ;;  %v321_v58 = vpop.f32.mrb[1].mxu1  ;;  %v309_v63 = vadd.f32 %v552_v48, %v308_v55 }
 0x1c0   :  { %374 = vmax.xlane.f32.xlu1 %v317_v52  ;;  %v634_v59 = vpop.f32.mrb[2].mxu1  ;;  %v322_v1 = vadd.f32 %v552_v48, %v321_v58 }
 0x1c1   :  { %v333_v60 = vadd.f32 %v634_v59, %v552_v48  ;;  %v324_v61 = vpop.f32.mrb[3].mxu1 }
 0x1c2   :  { %380 = vmax.xlane.f32.xlu0 %v330_v57  ;;  %v325_v4 = vadd.f32 %v552_v48, %v324_v61 }
 0x1c4   :  { %382 = vmax.xlane.f32.xlu1 %v333_v60 }
 0x1c6   :  { %368 = vmax.xlane.f32.xlu0 %v306_v62  ;;  %v637_v0 = vpop.f32.mrb[4].mxu1 }
 0x1c7   :  { %v337_v2 = vpop.f32.mrb[5].mxu1  ;;  %v346_v6 = vadd.f32 %v637_v0, %v552_v48 }
 0x1c8   :  { %370 = vmax.xlane.f32.xlu1 %v309_v63  ;;  %v638_v3 = vpop.f32.mrb[6].mxu1  ;;  %v818_v9 = vadd.f32 %v552_v48, %v337_v2 }
 0x1c9   :  { %v340_v5 = vpop.f32.mrb[7].mxu1  ;;  %v349_v7 = vadd.f32 %v638_v3, %v552_v48 }
 0x1ca   :  { %376 = vmax.xlane.f32.xlu0 %v322_v1  ;;  %v820_v12 = vadd.f32 %v552_v48, %v340_v5 }
 0x1cc   :  { %378 = vmax.xlane.f32.xlu1 %v325_v4 }
 0x1ce   :  { %388 = vmax.xlane.f32.xlu0 %v346_v6  ;;  %v641_v8 = vpop.f32.mrb[8].mxu1 }
 0x1cf   :  { %v353_v10 = vpop.f32.mrb[9].mxu1  ;;  %v829_v16 = vadd.f32 %v641_v8, %v552_v48 }
 0x1d0   :  { %390 = vmax.xlane.f32.xlu1 %v349_v7  ;;  %v642_v11 = vpop.f32.mrb[10].mxu1  ;;  %v823_v14 = vadd.f32 %v552_v48, %v353_v10 }
 0x1d1   :  { %v356_v13 = vpop.f32.mrb[11].mxu1  ;;  %v832_v17 = vadd.f32 %v642_v11, %v552_v48 }
 0x1d2   :  { %384 = vmax.xlane.f32.xlu0 %v818_v9  ;;  %v826_v15 = vadd.f32 %v552_v48, %v356_v13 }
 0x1d4   :  { %386 = vmax.xlane.f32.xlu1 %v820_v12 }
 0x1d6   :  { %392 = vmax.xlane.f32.xlu0 %v823_v14 }
 0x1d8   :  { %394 = vmax.xlane.f32.xlu1 %v826_v15 }
 0x1da   :  { %396 = vmax.xlane.f32.xlu0 %v829_v16 }
 0x1dc   :  { %398 = vmax.xlane.f32.xlu1 %v832_v17 }
 0x24b   :  { %v373_v18 = vpop.xlane.xlu0 %372 }
 0x24c   :  { %v836_v19 = vsub.f32 %v314_v51, %v373_v18 }
 0x24d   :  { %v375_v20 = vpop.xlane.xlu1 %374 }
 0x24e   :  { %v420_v21 = vmul.f32 1.442695, %v836_v19  ;;  %v839_v22 = vsub.f32 %v317_v52, %v375_v20 }
 0x24f   :  { %v381_v24 = vpop.xlane.xlu0 %380 }
 0x250   :  { %653 = vpow2.f32 %v420_v21  ;;  %v422_v23 = vmul.f32 1.442695, %v839_v22  ;;  %v842_v25 = vsub.f32 %v330_v57, %v381_v24 }
 0x251   :  { %v383_v26 = vpop.xlane.xlu1 %382 }
 0x252   :  { %655 = vpow2.f32 %v422_v23  ;;  %v428_v27 = vmul.f32 1.442695, %v842_v25  ;;  %v845_v28 = vsub.f32 %v333_v60, %v383_v26 }
 0x253   :  { %v369_v29 = vpop.xlane.xlu0 %368 }
 0x254   :  { %657 = vpow2.f32 %v428_v27  ;;  %v430_v30 = vmul.f32 1.442695, %v845_v28  ;;  %v848_v31 = vsub.f32 %v306_v62, %v369_v29 }
 0x255   :  { %v371_v32 = vpop.xlane.xlu1 %370 }
 0x256   :  { %659 = vpow2.f32 %v430_v30  ;;  %v416_v33 = vmul.f32 1.442695, %v848_v31  ;;  %v851_v34 = vsub.f32 %v309_v63, %v371_v32 }
 0x257   :  { %v377_v35 = vpop.xlane.xlu0 %376 }
 0x258   :  { %661 = vpow2.f32 %v416_v33  ;;  %v418_v36 = vmul.f32 1.442695, %v851_v34  ;;  %v854_v37 = vsub.f32 %v322_v1, %v377_v35 }
 0x259   :  { %v379_v39 = vpop.xlane.xlu1 %378 }
 0x25a   :  { %v654_v38 = vpop.eup %653  ;;  %663 = vpow2.f32 %v418_v36  ;;  %v424_v40 = vmul.f32 1.442695, %v854_v37  ;;  %v857_v41 = vsub.f32 %v325_v4, %v379_v39 }
 0x25b   :  { %452 = vadd.xlane.f32.xlu0 %v654_v38  ;;  %v389_v43 = vpop.xlane.xlu0 %388 }
 0x25c   :  { %v656_v42 = vpop.eup %655  ;;  %665 = vpow2.f32 %v424_v40  ;;  %v426_v44 = vmul.f32 1.442695, %v857_v41  ;;  %v860_v45 = vsub.f32 %v346_v6, %v389_v43 }
 0x25d   :  { %454 = vadd.xlane.f32.xlu1 %v656_v42  ;;  %v391_v46 = vpop.xlane.xlu1 %390 }
 0x25e   :  { %v658_v47 = vpop.eup %657  ;;  %667 = vpow2.f32 %v426_v44  ;;  %v436_v49 = vmul.f32 1.442695, %v860_v45  ;;  %v863_v48 = vsub.f32 %v349_v7, %v391_v46 }
 0x25f   :  { %460 = vadd.xlane.f32.xlu0 %v658_v47  ;;  %v385_v50 = vpop.xlane.xlu0 %384 }
 0x260   :  { %v660_v51 = vpop.eup %659  ;;  %669 = vpow2.f32 %v436_v49  ;;  %v438_v53 = vmul.f32 1.442695, %v863_v48  ;;  %v867_v54 = vsub.f32 %v818_v9, %v385_v50 }
 0x261   :  { %v387_v52 = vpop.xlane.xlu1 %386  ;;  %462 = vadd.xlane.f32.xlu1 %v660_v51 }
 0x262   :  { %v662_v55 = vpop.eup %661  ;;  %671 = vpow2.f32 %v438_v53  ;;  %v432_v56 = vmul.f32 1.442695, %v867_v54  ;;  %v871_v57 = vsub.f32 %v820_v12, %v387_v52 }
 0x263   :  { %448 = vadd.xlane.f32.xlu0 %v662_v55  ;;  %v393_v58 = vpop.xlane.xlu0 %392 }
 0x264   :  { %v664_v59 = vpop.eup %663  ;;  %673 = vpow2.f32 %v432_v56  ;;  %v434_v60 = vmul.f32 1.442695, %v871_v57  ;;  %v875_v61 = vsub.f32 %v823_v14, %v393_v58 }
 0x265   :  { %450 = vadd.xlane.f32.xlu1 %v664_v59  ;;  %v395_v62 = vpop.xlane.xlu1 %394 }
 0x266   :  { %v666_v63 = vpop.eup %665  ;;  %675 = vpow2.f32 %v434_v60  ;;  %v440_v0 = vmul.f32 1.442695, %v875_v61  ;;  %v879_v1 = vsub.f32 %v826_v15, %v395_v62 }
 0x267   :  { %456 = vadd.xlane.f32.xlu0 %v666_v63  ;;  %v397_v2 = vpop.xlane.xlu0 %396 }
 0x268   :  { %v668_v3 = vpop.eup %667  ;;  %677 = vpow2.f32 %v440_v0  ;;  %v442_v4 = vmul.f32 1.442695, %v879_v1  ;;  %v883_v5 = vsub.f32 %v829_v16, %v397_v2 }
 0x269   :  { %458 = vadd.xlane.f32.xlu1 %v668_v3  ;;  %v399_v6 = vpop.xlane.xlu1 %398 }
 0x26a   :  { %v670_v7 = vpop.eup %669  ;;  %679 = vpow2.f32 %v442_v4  ;;  %v444_v8 = vmul.f32 1.442695, %v883_v5  ;;  %v887_v9 = vsub.f32 %v832_v17, %v399_v6 }
 0x26b   :  { %468 = vadd.xlane.f32.xlu0 %v670_v7 }
 0x26c   :  { %v672_v10 = vpop.eup %671  ;;  %681 = vpow2.f32 %v444_v8  ;;  %v446_v11 = vmul.f32 1.442695, %v887_v9 }
 0x26d   :  { %470 = vadd.xlane.f32.xlu1 %v672_v10 }
 0x26e   :  { %v674_v12 = vpop.eup %673  ;;  %683 = vpow2.f32 %v446_v11 }
 0x26f   :  { %464 = vadd.xlane.f32.xlu0 %v674_v12 }
 0x270   :  { %v676_v13 = vpop.eup %675 }
 0x271   :  { %466 = vadd.xlane.f32.xlu1 %v676_v13 }
 0x272   :  { %v678_v14 = vpop.eup %677 }
 0x273   :  { %472 = vadd.xlane.f32.xlu0 %v678_v14 }
 0x274   :  { %v680_v15 = vpop.eup %679 }
 0x275   :  { %474 = vadd.xlane.f32.xlu1 %v680_v15 }
 0x276   :  { %v682_v16 = vpop.eup %681 }
 0x277   :  { %476 = vadd.xlane.f32.xlu0 %v682_v16 }
 0x278   :  { %v684_v18 = vpop.eup %683 }
 0x279   :  { %478 = vadd.xlane.f32.xlu1 %v684_v18 }
 0x2e8   :  { %v453_v17 = vpop.xlane.xlu0 %452 }
 0x2e9   :  { %685 = vlog2.f32 %v453_v17 }
 0x2ea   :  { %v455_v20 = vpop.xlane.xlu1 %454 }
 0x2eb   :  { %687 = vlog2.f32 %v455_v20 }
 0x2ec   :  { %v461_v21 = vpop.xlane.xlu0 %460 }
 0x2ed   :  { %689 = vlog2.f32 %v461_v21 }
 0x2ee   :  { %v463_v23 = vpop.xlane.xlu1 %462 }
 0x2ef   :  { %691 = vlog2.f32 %v463_v23 }
 0x2f0   :  { %v449_v24 = vpop.xlane.xlu0 %448 }
 0x2f1   :  { %693 = vlog2.f32 %v449_v24 }
 0x2f2   :  { %v451_v27 = vpop.xlane.xlu1 %450 }
 0x2f3   :  { %v686_v26 = vpop.eup %685  ;;  %695 = vlog2.f32 %v451_v27 }
 0x2f4   :  { %v485_v29 = vmul.f32 0.6931472, %v686_v26  ;;  %v457_v32 = vpop.xlane.xlu0 %456 }
 0x2f5   :  { %v688_v30 = vpop.eup %687  ;;  %697 = vlog2.f32 %v457_v32 }
 0x2f6   :  { %v514_v33 = vsub.f32 %v836_v19, %v485_v29  ;;  %v487_v35 = vmul.f32 0.6931472, %v688_v30  ;;  %v459_v36 = vpop.xlane.xlu1 %458 }
 0x2f7   :  { %v690_v38 = vpop.eup %689  ;;  %699 = vlog2.f32 %v459_v36 }
 0x2f8   :  { %530 = vst [vmem:[%s962_s8 + $0x10] sm:$0xff] %v514_v33  ;;  %v515_v39 = vsub.f32 %v839_v22, %v487_v35  ;;  %v493_v40 = vmul.f32 0.6931472, %v690_v38  ;;  %v469_v42 = vpop.xlane.xlu0 %468 }
 0x2f9   :  { %v692_v43 = vpop.eup %691  ;;  %701 = vlog2.f32 %v469_v42 }
 0x2fa   :  { %531 = vst [vmem:[%s962_s8 + $0x18] sm:$0xff] %v515_v39  ;;  %v518_v19 = vsub.f32 %v842_v25, %v493_v40  ;;  %v495_v44 = vmul.f32 0.6931472, %v692_v43  ;;  %v471_v46 = vpop.xlane.xlu1 %470 }
 0x2fb   :  { %v694_v47 = vpop.eup %693  ;;  %703 = vlog2.f32 %v471_v46 }
 0x2fc   :  { %534 = vst [vmem:[%s962_s8 + $0x30] sm:$0xff] %v518_v19  ;;  %v519_v22 = vsub.f32 %v845_v28, %v495_v44  ;;  %v481_v49 = vmul.f32 0.6931472, %v694_v47  ;;  %v465_v50 = vpop.xlane.xlu0 %464 }
 0x2fd   :  { %v696_v51 = vpop.eup %695  ;;  %705 = vlog2.f32 %v465_v50 }
 0x2fe   :  { %535 = vst [vmem:[%s962_s8 + $0x38] sm:$0xff] %v519_v22  ;;  %v512_v25 = vsub.f32 %v848_v31, %v481_v49  ;;  %v483_v53 = vmul.f32 0.6931472, %v696_v51  ;;  %v467_v52 = vpop.xlane.xlu1 %466 }
 0x2ff   :  { %v698_v55 = vpop.eup %697  ;;  %707 = vlog2.f32 %v467_v52 }
 0x300   :  { %528 = vst [vmem:[%s962_s8] sm:$0xff] %v512_v25  ;;  %v513_v28 = vsub.f32 %v851_v34, %v483_v53  ;;  %v489_v56 = vmul.f32 0.6931472, %v698_v55  ;;  %v473_v58 = vpop.xlane.xlu0 %472 }
 0x301   :  { %v700_v59 = vpop.eup %699  ;;  %709 = vlog2.f32 %v473_v58 }
 0x302   :  { %529 = vst [vmem:[%s962_s8 + $0x8] sm:$0xff] %v513_v28  ;;  %v516_v31 = vsub.f32 %v854_v37, %v489_v56  ;;  %v491_v60 = vmul.f32 0.6931472, %v700_v59  ;;  %v475_v62 = vpop.xlane.xlu1 %474 }
 0x303   :  { %v702_v63 = vpop.eup %701  ;;  %711 = vlog2.f32 %v475_v62 }
 0x304   :  { %532 = vst [vmem:[%s962_s8 + $0x20] sm:$0xff] %v516_v31  ;;  %v517_v34 = vsub.f32 %v857_v41, %v491_v60  ;;  %v501_v0 = vmul.f32 0.6931472, %v702_v63  ;;  %v477_v2 = vpop.xlane.xlu0 %476 }
 0x305   :  { %v704_v3 = vpop.eup %703  ;;  %713 = vlog2.f32 %v477_v2 }
 0x306   :  { %533 = vst [vmem:[%s962_s8 + $0x28] sm:$0xff] %v517_v34  ;;  %v522_v37 = vsub.f32 %v860_v45, %v501_v0  ;;  %v503_v4 = vmul.f32 0.6931472, %v704_v3  ;;  %v479_v6 = vpop.xlane.xlu1 %478 }
 0x307   :  { %v706_v7 = vpop.eup %705  ;;  %715 = vlog2.f32 %v479_v6 }
 0x308   :  { %538 = vst [vmem:[%s962_s8 + $0x50] sm:$0xff] %v522_v37  ;;  %v523_v41 = vsub.f32 %v863_v48, %v503_v4  ;;  %v497_v8 = vmul.f32 0.6931472, %v706_v7 }
 0x309   :  { %v708_v10 = vpop.eup %707 }
 0x30a   :  { %539 = vst [vmem:[%s962_s8 + $0x58] sm:$0xff] %v523_v41  ;;  %v520_v11 = vsub.f32 %v867_v54, %v497_v8  ;;  %v499_v12 = vmul.f32 0.6931472, %v708_v10 }
 0x30b   :  { %v710_v45 = vpop.eup %709 }
 0x30c   :  { %536 = vst [vmem:[%s962_s8 + $0x40] sm:$0xff] %v520_v11  ;;  %v521_v13 = vsub.f32 %v871_v57, %v499_v12  ;;  %v505_v14 = vmul.f32 0.6931472, %v710_v45 }
 0x30d   :  { %v712_v15 = vpop.eup %711 }
 0x30e   :  { %537 = vst [vmem:[%s962_s8 + $0x48] sm:$0xff] %v521_v13  ;;  %v524_v48 = vsub.f32 %v875_v61, %v505_v14  ;;  %v507_v16 = vmul.f32 0.6931472, %v712_v15 }
 0x30f   :  { %v714_v18 = vpop.eup %713 }
 0x310   :  { %540 = vst [vmem:[%s962_s8 + $0x60] sm:$0xff] %v524_v48  ;;  %v525_v54 = vsub.f32 %v879_v1, %v507_v16  ;;  %v509_v17 = vmul.f32 0.6931472, %v714_v18 }
 0x311   :  { %v716_v20 = vpop.eup %715 }
 0x312   :  { %541 = vst [vmem:[%s962_s8 + $0x68] sm:$0xff] %v525_v54  ;;  %v526_v57 = vsub.f32 %v883_v5, %v509_v17  ;;  %v511_v21 = vmul.f32 0.6931472, %v716_v20 }
 0x314   :  { %542 = vst [vmem:[%s962_s8 + $0x70] sm:$0xff] %v526_v57  ;;  %v527_v61 = vsub.f32 %v887_v9, %v511_v21 }
 0x316   :  { %543 = vst [vmem:[%s962_s8 + $0x78] sm:$0xff] %v527_v61 }

</bundles_post_ra>
